<compile_context>
chip_gen: v7x
topology: tpu7x:2x2x1
jax: 0.10.0
libtpu: 0.0.40
codegen_flags: <defaults>
</compile_context>

<pallas_src>
import functools

import jax
import jax.numpy as jnp
from jax.experimental import pallas as pl
from jax.experimental.pallas import tpu as pltpu


# --------------------------------------------------------------------------
# Fast path: stride == 1 and "same"-shaped output (Ho == H, Wo == W), which
# covers this module's common configs (k=3, p=1 and the dilated p=d variants,
# plus the k=1, p=0 default).
# --------------------------------------------------------------------------
def _dwsep_same_kernel(x_ref, wtap_ref, wpw_ref, o_ref, xbuf_ref, *,
                       offs, HW, M, C_in):
    # x_ref   : (1, C_in, HW)        one batch element, spatial flattened
    # wtap_ref: (KH*KW, C_in, HW)    per-tap depthwise weight x pad-mask (f32)
    # wpw_ref : (C_out, C_in)        pointwise 1x1 weight (f32)
    # o_ref   : (1, C_out, HW)       lane-dense output block
    # xbuf_ref: (C_in, HW + 2*M)     VMEM staging buffer with zero margins

    # Stage the flat input with zero margins so every tap is a plain static
    # (possibly lane-unaligned) slice: xbuf[:, M+off : M+off+HW].
    if M > 0:
        zeros_margin = jnp.zeros((C_in, M), jnp.float32)
        xbuf_ref[:, 0:M] = zeros_margin
        xbuf_ref[:, M + HW:M + HW + M] = zeros_margin
    xbuf_ref[:, M:M + HW] = x_ref[0].astype(jnp.float32)

    # Depthwise KxK: K*K lane-dense FMAs (pad handled by the mask folded into
    # the tap weights, so out-of-range / wrong-row reads contribute 0).
    acc = jnp.zeros((C_in, HW), jnp.float32)
    for k, off in enumerate(offs):
        patch = xbuf_ref[:, M + off:M + off + HW]       # (C_in, HW)
        acc = acc + patch * wtap_ref[k]

    # Pointwise 1x1: channel mix on the MXU, directly in (C_out, HW) layout
    # -> lane-dense, channel-major stores (no output transpose needed).
    out = jnp.dot(wpw_ref[...], acc, preferred_element_type=jnp.float32)
    o_ref[0] = out.astype(o_ref.dtype)


def _dwsep_same(x, wdw, wpw, *, KH, KW, padding, dilation):
    N, C_in, H, W = x.shape
    C_out = int(wpw.shape[0])
    HW = H * W

    # Precompute per-tap (depthwise weight x pad mask) on tiny weight-sized
    # arrays (this is weight prep, not a pass over the activation tensor).
    ho = jnp.arange(H, dtype=jnp.int32)[:, None]
    wo = jnp.arange(W, dtype=jnp.int32)[None, :]
    taps, offs = [], []
    for kh in range(KH):
        for kw in range(KW):
            dh = kh * dilation - padding
            dw = kw * dilation - padding
            ih = ho + dh
            iw = wo + dw
            mask = ((ih >= 0) & (ih < H) & (iw >= 0) & (iw < W))
            mask = mask.astype(jnp.float32).reshape(1, HW)
            taps.append(wdw[:, kh, kw].astype(jnp.float32)[:, None] * mask)
            offs.append(dh * W + dw)
    wtap = jnp.stack(taps, axis=0)                       # (KH*KW, C_in, HW)
    offs = tuple(int(o) for o in offs)
    M = max(abs(o) for o in offs)

    x_flat = x.reshape(N, C_in, HW)                      # free (row-major)

    kernel = functools.partial(_dwsep_same_kernel, offs=offs, HW=HW, M=M,
                               C_in=C_in)

    flops = 2 * N * HW * C_in * (KH * KW + C_out)
    bytes_accessed = 4 * (int(x.size) + N * C_out * HW
                          + int(wtap.size) + int(wpw.size))

    out_flat = pl.pallas_call(
        kernel,
        out_shape=jax.ShapeDtypeStruct((N, C_out, HW), x.dtype),
        grid_spec=pltpu.PrefetchScalarGridSpec(
            num_scalar_prefetch=0,
            grid=(N,),
            in_specs=[
                pl.BlockSpec((1, C_in, HW), lambda b: (b, 0, 0)),
                pl.BlockSpec((KH * KW, C_in, HW), lambda b: (0, 0, 0)),
                pl.BlockSpec((C_out, C_in), lambda b: (0, 0)),
            ],
            out_specs=pl.BlockSpec((1, C_out, HW), lambda b: (b, 0, 0)),
            scratch_shapes=[pltpu.VMEM((C_in, HW + 2 * M), jnp.float32)],
        ),
        compiler_params=pltpu.CompilerParams(
            dimension_semantics=("parallel",)),
        cost_estimate=pl.CostEstimate(flops=flops, transcendentals=0,
                                      bytes_accessed=bytes_accessed),
    )(x_flat, wtap, wpw.astype(jnp.float32))

    return out_flat.reshape(N, C_out, H, W)              # free (row-major)


# --------------------------------------------------------------------------
# General fallback: any stride / padding / dilation. Pads inside VMEM,
# accumulates the depthwise conv in (C_in, Ho, Wo) layout (W on lanes) and
# mixes channels on the VPU (channel counts are small for this module).
# --------------------------------------------------------------------------
def _dwsep_general_kernel(x_ref, wdw_ref, wpw_ref, o_ref, xpad_ref, *,
                          KH, KW, stride, padding, dilation,
                          H, W, Ho, Wo, C_in, C_out):
    # Zero-pad inside VMEM (no HBM pad pass).
    if padding > 0:
        xpad_ref[...] = jnp.zeros_like(xpad_ref)
    xpad_ref[:, padding:padding + H, padding:padding + W] = \
        x_ref[0].astype(jnp.float32)

    acc = jnp.zeros((C_in, Ho, Wo), jnp.float32)
    for kh in range(KH):
        for kw in range(KW):
            h0, w0 = kh * dilation, kw * dilation
            if stride == 1:
                patch = xpad_ref[:, h0:h0 + Ho, w0:w0 + Wo]
            else:
                # Contiguous window load, then static strided downsample.
                win = xpad_ref[:, h0:h0 + (Ho - 1) * stride + 1,
                                  w0:w0 + (Wo - 1) * stride + 1]
                patch = jax.lax.slice(win, (0, 0, 0), win.shape,
                                      (1, stride, stride))
            acc = acc + patch * wdw_ref[kh * KW + kw]     # (C_in,1,1) bcast

    for co in range(C_out):
        val = jnp.zeros((Ho, Wo), jnp.float32)
        for c in range(C_in):
            val = val + acc[c] * wpw_ref[co, c]           # (1,1) bcast
        o_ref[0, co] = val.astype(o_ref.dtype)


def _dwsep_general(x, wdw, wpw, *, stride, padding, dilation, Ho, Wo):
    N, C_in, H, W = x.shape
    KH, KW = int(wdw.shape[1]), int(wdw.shape[2])
    C_out = int(wpw.shape[0])
    Hp, Wp = H + 2 * padding, W + 2 * padding

    wdw_k = wdw.astype(jnp.float32).transpose(1, 2, 0) \
               .reshape(KH * KW, C_in)[:, :, None, None]  # (KH*KW, C_in, 1, 1)
    wpw_k = wpw.astype(jnp.float32)[:, :, None, None]     # (C_out, C_in, 1, 1)

    kernel = functools.partial(_dwsep_general_kernel, KH=KH, KW=KW,
                               stride=stride, padding=padding,
                               dilation=dilation, H=H, W=W, Ho=Ho, Wo=Wo,
                               C_in=C_in, C_out=C_out)

    return pl.pallas_call(
        kernel,
        out_shape=jax.ShapeDtypeStruct((N, C_out, Ho, Wo), x.dtype),
        grid_spec=pltpu.PrefetchScalarGridSpec(
            num_scalar_prefetch=0,
            grid=(N,),
            in_specs=[
                pl.BlockSpec((1, C_in, H, W), lambda b: (b, 0, 0, 0)),
                pl.BlockSpec((KH * KW, C_in, 1, 1), lambda b: (0, 0, 0, 0)),
                pl.BlockSpec((C_out, C_in, 1, 1), lambda b: (0, 0, 0, 0)),
            ],
            out_specs=pl.BlockSpec((1, C_out, Ho, Wo), lambda b: (b, 0, 0, 0)),
            scratch_shapes=[pltpu.VMEM((C_in, Hp, Wp), jnp.float32)],
        ),
        compiler_params=pltpu.CompilerParams(
            dimension_semantics=("parallel",)),
    )(x, wdw_k, wpw_k)


# --------------------------------------------------------------------------
# Public wrapper (PyTorch Conv2d semantics, bias=False).
# --------------------------------------------------------------------------
def depthwise_separable_conv2d(x_nchw, w_dw, w_pw, *, stride=1, padding=0,
                               dilation=1):
    """x_nchw: (N, C_in, H, W); w_dw: (C_in, 1, KH, KW); w_pw: (C_out, C_in, 1, 1).
    Returns (N, C_out, Ho, Wo)."""
    N, C_in, H, W = x_nchw.shape
    KH, KW = int(w_dw.shape[2]), int(w_dw.shape[3])
    Ho = (H + 2 * padding - dilation * (KH - 1) - 1) // stride + 1
    Wo = (W + 2 * padding - dilation * (KW - 1) - 1) // stride + 1

    wdw = w_dw[:, 0, :, :]          # (C_in, KH, KW)
    wpw = w_pw[:, :, 0, 0]          # (C_out, C_in)

    if stride == 1 and Ho == H and Wo == W:
        return _dwsep_same(x_nchw, wdw, wpw, KH=KH, KW=KW,
                           padding=padding, dilation=dilation)
    return _dwsep_general(x_nchw, wdw, wpw, stride=stride, padding=padding,
                          dilation=dilation, Ho=Ho, Wo=Wo)


def _reference(x_nchw, w_dw, w_pw, *, stride, padding, dilation):
    # Pure-JAX reference (PyTorch-equivalent semantics).
    C_in = x_nchw.shape[1]
    dw = jax.lax.conv_general_dilated(
        x_nchw, w_dw, window_strides=(stride, stride),
        padding=((padding, padding), (padding, padding)),
        rhs_dilation=(dilation, dilation),
        dimension_numbers=("NCHW", "OIHW", "NCHW"),
        feature_group_count=C_in)
    return jax.lax.conv_general_dilated(
        dw, w_pw, window_strides=(1, 1), padding="VALID",
        dimension_numbers=("NCHW", "OIHW", "NCHW"))


if __name__ == "__main__":
    # Module config: c_in=4, c_out=8, kernel_size=3, stride=1, padding=1,
    # dilation=1, bias=False.
    N, C_in, H, W = 2, 4, 16, 16
    C_out, K, stride, padding, dilation = 8, 3, 1, 1, 1

    key = jax.random.PRNGKey(0)
    kx, kdw, kpw = jax.random.split(key, 3)
    x = jax.random.normal(kx, (N, C_in, H, W), dtype=jnp.float32)
    w_dw = 0.1 * jax.random.normal(kdw, (C_in, 1, K, K), dtype=jnp.float32)
    w_pw = 0.1 * jax.random.normal(kpw, (C_out, C_in, 1, 1), dtype=jnp.float32)

    out = depthwise_separable_conv2d(x, w_dw, w_pw, stride=stride,
                                     padding=padding, dilation=dilation)
    out = jax.block_until_ready(out)

    ref = _reference(x, w_dw, w_pw, stride=stride, padding=padding,
                     dilation=dilation)
    assert out.shape == ref.shape == (N, C_out, H, W)
    assert jnp.max(jnp.abs(out - ref)) < 1e-4

    print("KERNEL_OK")
</pallas_src>

<mosaic_0001>
module attributes {stable_mosaic.version = 11 : i64} {
  func.func @_dwsep_same_kernel(%arg0: i32, %arg1: memref<1x4x256xf32, #tpu.memory_space<vmem>>, %arg2: memref<9x4x256xf32, #tpu.memory_space<vmem>>, %arg3: memref<8x4xf32, #tpu.memory_space<vmem>>, %arg4: memref<1x8x256xf32, #tpu.memory_space<vmem>>, %arg5: memref<4x290xf32, #tpu.memory_space<vmem>>) attributes {dimension_semantics = [#tpu.dimension_semantics<parallel>], iteration_bounds = array<i64: 2>, scalar_prefetch = 0 : i64, scratch_operands = 1 : i64, tpu.core_type = #tpu.core_type<tc>, window_params = [{transform_indices = @transform_0, window_bounds = array<i64: 1, 4, 256>}, {pipeline_mode = #tpu.pipeline_mode<synchronous>, transform_indices = @transform_1, window_bounds = array<i64: 9, 4, 256>}, {pipeline_mode = #tpu.pipeline_mode<synchronous>, transform_indices = @transform_2, window_bounds = array<i64: 8, 4>}, {transform_indices = @transform_3, window_bounds = array<i64: 1, 8, 256>}]} {
    %cst = arith.constant 0.000000e+00 : f32
    %0 = vector.broadcast %cst : f32 to vector<4x17xf32>
    %c0 = arith.constant 0 : index
    %c0_0 = arith.constant 0 : index
    %1 = vector.load %arg5[%c0, %c0_0] : memref<4x290xf32, #tpu.memory_space<vmem>>, vector<4x17xf32>
    tpu.vector_store %arg5[%c0, %c0_0], %0 {strides = array<i32>} : memref<4x290xf32, #tpu.memory_space<vmem>>, vector<4x17xf32>,
    %c0_1 = arith.constant 0 : index
    %c273 = arith.constant 273 : index
    %2 = vector.load %arg5[%c0_1, %c273] : memref<4x290xf32, #tpu.memory_space<vmem>>, vector<4x17xf32>
    tpu.vector_store %arg5[%c0_1, %c273], %0 {strides = array<i32>} : memref<4x290xf32, #tpu.memory_space<vmem>>, vector<4x17xf32>,
    %c0_2 = arith.constant 0 : index
    %c0_3 = arith.constant 0 : index
    %c0_4 = arith.constant 0 : index
    %3 = vector.load %arg1[%c0_2, %c0_3, %c0_4] : memref<1x4x256xf32, #tpu.memory_space<vmem>>, vector<1x4x256xf32>
    %4 = vector.shape_cast %3 : vector<1x4x256xf32> to vector<4x256xf32>
    %c0_5 = arith.constant 0 : index
    %c17 = arith.constant 17 : index
    %5 = vector.load %arg5[%c0_5, %c17] : memref<4x290xf32, #tpu.memory_space<vmem>>, vector<4x256xf32>
    tpu.vector_store %arg5[%c0_5, %c17], %4 {strides = array<i32>} : memref<4x290xf32, #tpu.memory_space<vmem>>, vector<4x256xf32>,
    %cst_6 = arith.constant 0.000000e+00 : f32
    %6 = vector.broadcast %cst_6 : f32 to vector<4x256xf32>
    %c0_7 = arith.constant 0 : index
    %c0_8 = arith.constant 0 : index
    %7 = vector.load %arg5[%c0_7, %c0_8] : memref<4x290xf32, #tpu.memory_space<vmem>>, vector<4x256xf32>
    %c0_9 = arith.constant 0 : index
    %c0_10 = arith.constant 0 : index
    %c0_11 = arith.constant 0 : index
    %8 = vector.load %arg2[%c0_9, %c0_10, %c0_11] : memref<9x4x256xf32, #tpu.memory_space<vmem>>, vector<1x4x256xf32>
    %9 = vector.shape_cast %8 : vector<1x4x256xf32> to vector<4x256xf32>
    %10 = arith.mulf %7, %9 : vector<4x256xf32>
    %11 = arith.addf %6, %10 : vector<4x256xf32>
    %c0_12 = arith.constant 0 : index
    %c1 = arith.constant 1 : index
    %12 = vector.load %arg5[%c0_12, %c1] : memref<4x290xf32, #tpu.memory_space<vmem>>, vector<4x256xf32>
    %c1_13 = arith.constant 1 : index
    %c0_14 = arith.constant 0 : index
    %c0_15 = arith.constant 0 : index
    %13 = vector.load %arg2[%c1_13, %c0_14, %c0_15] : memref<9x4x256xf32, #tpu.memory_space<vmem>>, vector<1x4x256xf32>
    %14 = vector.shape_cast %13 : vector<1x4x256xf32> to vector<4x256xf32>
    %15 = arith.mulf %12, %14 : vector<4x256xf32>
    %16 = arith.addf %11, %15 : vector<4x256xf32>
    %c0_16 = arith.constant 0 : index
    %c2 = arith.constant 2 : index
    %17 = vector.load %arg5[%c0_16, %c2] : memref<4x290xf32, #tpu.memory_space<vmem>>, vector<4x256xf32>
    %c2_17 = arith.constant 2 : index
    %c0_18 = arith.constant 0 : index
    %c0_19 = arith.constant 0 : index
    %18 = vector.load %arg2[%c2_17, %c0_18, %c0_19] : memref<9x4x256xf32, #tpu.memory_space<vmem>>, vector<1x4x256xf32>
    %19 = vector.shape_cast %18 : vector<1x4x256xf32> to vector<4x256xf32>
    %20 = arith.mulf %17, %19 : vector<4x256xf32>
    %21 = arith.addf %16, %20 : vector<4x256xf32>
    %c0_20 = arith.constant 0 : index
    %c16 = arith.constant 16 : index
    %22 = vector.load %arg5[%c0_20, %c16] : memref<4x290xf32, #tpu.memory_space<vmem>>, vector<4x256xf32>
    %c3 = arith.constant 3 : index
    %c0_21 = arith.constant 0 : index
    %c0_22 = arith.constant 0 : index
    %23 = vector.load %arg2[%c3, %c0_21, %c0_22] : memref<9x4x256xf32, #tpu.memory_space<vmem>>, vector<1x4x256xf32>
    %24 = vector.shape_cast %23 : vector<1x4x256xf32> to vector<4x256xf32>
    %25 = arith.mulf %22, %24 : vector<4x256xf32>
    %26 = arith.addf %21, %25 : vector<4x256xf32>
    %c0_23 = arith.constant 0 : index
    %c17_24 = arith.constant 17 : index
    %27 = vector.load %arg5[%c0_23, %c17_24] : memref<4x290xf32, #tpu.memory_space<vmem>>, vector<4x256xf32>
    %c4 = arith.constant 4 : index
    %c0_25 = arith.constant 0 : index
    %c0_26 = arith.constant 0 : index
    %28 = vector.load %arg2[%c4, %c0_25, %c0_26] : memref<9x4x256xf32, #tpu.memory_space<vmem>>, vector<1x4x256xf32>
    %29 = vector.shape_cast %28 : vector<1x4x256xf32> to vector<4x256xf32>
    %30 = arith.mulf %27, %29 : vector<4x256xf32>
    %31 = arith.addf %26, %30 : vector<4x256xf32>
    %c0_27 = arith.constant 0 : index
    %c18 = arith.constant 18 : index
    %32 = vector.load %arg5[%c0_27, %c18] : memref<4x290xf32, #tpu.memory_space<vmem>>, vector<4x256xf32>
    %c5 = arith.constant 5 : index
    %c0_28 = arith.constant 0 : index
    %c0_29 = arith.constant 0 : index
    %33 = vector.load %arg2[%c5, %c0_28, %c0_29] : memref<9x4x256xf32, #tpu.memory_space<vmem>>, vector<1x4x256xf32>
    %34 = vector.shape_cast %33 : vector<1x4x256xf32> to vector<4x256xf32>
    %35 = arith.mulf %32, %34 : vector<4x256xf32>
    %36 = arith.addf %31, %35 : vector<4x256xf32>
    %c0_30 = arith.constant 0 : index
    %c32 = arith.constant 32 : index
    %37 = vector.load %arg5[%c0_30, %c32] : memref<4x290xf32, #tpu.memory_space<vmem>>, vector<4x256xf32>
    %c6 = arith.constant 6 : index
    %c0_31 = arith.constant 0 : index
    %c0_32 = arith.constant 0 : index
    %38 = vector.load %arg2[%c6, %c0_31, %c0_32] : memref<9x4x256xf32, #tpu.memory_space<vmem>>, vector<1x4x256xf32>
    %39 = vector.shape_cast %38 : vector<1x4x256xf32> to vector<4x256xf32>
    %40 = arith.mulf %37, %39 : vector<4x256xf32>
    %41 = arith.addf %36, %40 : vector<4x256xf32>
    %c0_33 = arith.constant 0 : index
    %c33 = arith.constant 33 : index
    %42 = vector.load %arg5[%c0_33, %c33] : memref<4x290xf32, #tpu.memory_space<vmem>>, vector<4x256xf32>
    %c7 = arith.constant 7 : index
    %c0_34 = arith.constant 0 : index
    %c0_35 = arith.constant 0 : index
    %43 = vector.load %arg2[%c7, %c0_34, %c0_35] : memref<9x4x256xf32, #tpu.memory_space<vmem>>, vector<1x4x256xf32>
    %44 = vector.shape_cast %43 : vector<1x4x256xf32> to vector<4x256xf32>
    %45 = arith.mulf %42, %44 : vector<4x256xf32>
    %46 = arith.addf %41, %45 : vector<4x256xf32>
    %c0_36 = arith.constant 0 : index
    %c34 = arith.constant 34 : index
    %47 = vector.load %arg5[%c0_36, %c34] : memref<4x290xf32, #tpu.memory_space<vmem>>, vector<4x256xf32>
    %c8 = arith.constant 8 : index
    %c0_37 = arith.constant 0 : index
    %c0_38 = arith.constant 0 : index
    %48 = vector.load %arg2[%c8, %c0_37, %c0_38] : memref<9x4x256xf32, #tpu.memory_space<vmem>>, vector<1x4x256xf32>
    %49 = vector.shape_cast %48 : vector<1x4x256xf32> to vector<4x256xf32>
    %50 = arith.mulf %47, %49 : vector<4x256xf32>
    %51 = arith.addf %46, %50 : vector<4x256xf32>
    %c0_39 = arith.constant 0 : index
    %c0_40 = arith.constant 0 : index
    %52 = vector.load %arg3[%c0_39, %c0_40] : memref<8x4xf32, #tpu.memory_space<vmem>>, vector<8x4xf32>
    %cst_41 = arith.constant dense<0.000000e+00> : vector<8x256xf32>
    %53 = tpu.matmul %52, %51, %cst_41 {dimension_numbers = #tpu.dot_dimension_numbers<[1], [0], [0], [1], [0, 0, 1, 1], [], []>} : vector<8x4xf32>, vector<4x256xf32>, vector<8x256xf32> -> vector<8x256xf32>
    %c0_42 = arith.constant 0 : index
    %c0_43 = arith.constant 0 : index
    %c0_44 = arith.constant 0 : index
    %54 = vector.load %arg4[%c0_42, %c0_43, %c0_44] : memref<1x8x256xf32, #tpu.memory_space<vmem>>, vector<1x8x256xf32>
    %55 = vector.shape_cast %54 : vector<1x8x256xf32> to vector<8x256xf32>
    %56 = vector.shape_cast %53 : vector<8x256xf32> to vector<1x8x256xf32>
    tpu.vector_store %arg4[%c0_42, %c0_43, %c0_44], %56 {strides = array<i32>} : memref<1x8x256xf32, #tpu.memory_space<vmem>>, vector<1x8x256xf32>,
    return
  }
  func.func @transform_0(%arg0: i32) -> (i32, i32, i32) {
    %c0_i32 = arith.constant 0 : i32
    %c0_i32_0 = arith.constant 0 : i32
    %c0_i32_1 = arith.constant 0 : i32
    return %arg0, %c0_i32, %c0_i32_0 : i32, i32, i32
  }
  func.func @transform_1(%arg0: i32) -> (i32, i32, i32) {
    %c0_i32 = arith.constant 0 : i32
    %c0_i32_0 = arith.constant 0 : i32
    %c0_i32_1 = arith.constant 0 : i32
    %c0_i32_2 = arith.constant 0 : i32
    return %c0_i32, %c0_i32_0, %c0_i32_1 : i32, i32, i32
  }
  func.func @transform_2(%arg0: i32) -> (i32, i32) {
    %c0_i32 = arith.constant 0 : i32
    %c0_i32_0 = arith.constant 0 : i32
    %c0_i32_1 = arith.constant 0 : i32
    return %c0_i32, %c0_i32_0 : i32, i32
  }
  func.func @transform_3(%arg0: i32) -> (i32, i32, i32) {
    %c0_i32 = arith.constant 0 : i32
    %c0_i32_0 = arith.constant 0 : i32
    %c0_i32_1 = arith.constant 0 : i32
    return %arg0, %c0_i32, %c0_i32_0 : i32, i32, i32
  }
}

</mosaic_0001>

<bundles_post_ra>
// kernel: tpu_custom_call.1
= control target key start
LH: loop header
LB: loop body
LE: loop exit
PB: predicated region body
PF: predicated region fallthrough
CT: control target
= control target key end

     0   :  { %8 = vsyncpa [#allocation4], 0  ;;  %s1098_s0 = inlined_call_operand.hbm [shape: f32[2,4,256], index: 0, kind: input, shape index: {}]   ;;  %s1099_s1 = inlined_call_operand.hbm [shape: f32[9,4,256], index: 1, kind: input, shape index: {}]   ;;  %s1100_s2 = inlined_call_operand.vmem [shape: f32[8,4], index: 2, kind: input, shape index: {}]   ;;  %s1101_s3 = inlined_call_operand.hbm [shape: f32[2,8,256], index: 3, kind: output, shape index: {}]  }
   0x1   :  { %10 = vsyncpa [#allocation4 + $0x1], 0 }
   0x2   :  { %11 = vsyncpa [#allocation7], 0 }
   0x3   :  { %12 = vsyncpa [#allocation5], 0 }
   0x4   :  { %14 = vsyncpa [#allocation5 + $0x1], 0  ;;  %s873_s12 = smov 0   ;;  %s875_s13 = smov 0  }
   0x5   :  { %s877_s14 = smov 0   ;;  %s879_s15 = smov 0  }
   0x6 LB: > { %s894_s16 = sadd.s32 4294967295, %s829_s15   ;;  %s604_s17 = sadd.s32 4294967294, %s829_s15   ;;  %s829_s15 = sphi %s879_s15, %s1121_s15   ;;  %s825_s14 = sphi %s877_s14, %s1120_s14   ;;  %s821_s13 = sphi %s875_s13, %s1119_s13   ;;  %s817_s12 = sphi %s873_s12, %s1118_s12  }
   0x7   : > { %p40_p0 = scmp.ne.s32.totalorder %s821_s13, %s817_s12  ;;  %p1102_p1 = scmp.eq.s32.totalorder %s894_s16, 0 }
   0x8   : > { %p112_p3 = scmp.eq.s32.totalorder %s604_s17, 1  ;;  %p605_p5 = scmp.ge.s32.totalorder %s829_s15, 1 }
   0x9   : > { %p903_p4 = por %p1102_p1, %p40_p0  ;;  %p119_p7 = scmp.lt.s32.totalorder %s829_s15, 3 }
   0xa   : > { %p908_p6 = por %p112_p3, %p40_p0  ;;  %s831_s21 = smov [#allocation6]  }
   0xb   : > { %s1105_s18 = scalar_select %p903_p4, 1, 0 }
   0xc   : > { %s1106_s19 = scalar_select %p908_p6, 1, 0 }
   0xd   : > { %p913_p8 = pnand %p605_p5, %p119_p7  ;;  %s131_s22 = sshll.u32 %s831_s21, 4  ;;  %s917_s22 = int_to_ptr.vmem [resolvable:$true] %s131_s22 }
   0xe   : > { %s929_s24 = sadd.s32 1, %s829_s15   ;;  %s27_s25 = sadd.s32 1, %s825_s14 }
   0xf   : > { %s1107_s20 = scalar_select %p913_p8, 1, 0 }
  0x10   : > { %p633_p9 = pneg %p913_p8  ;;  %s24_s26 = ssub.s32 %s829_s15, %s929_s24 }
  0x11   : > { %s701_s29 = scalar_lea.hbm %s1099_s1, 1152 }
  0x12   : > { %p924_p11 = pnand %p633_p9, %p1102_p1  ;;  %p702_p12 = scmp.ne.s32.totalorder %s1099_s1, %s701_s29 }
  0x13   : > { %p708_p5 = scmp.lt.u32.totalorder %s701_s29, %s1099_s1 }
  0x14   : > { %p703_p13 = pneg %p924_p11 }
  0x16   : > { %p704_p0 = pnand %p703_p13, %p702_p12 }
  0x18   : > { %p705_p3 = pneg %p704_p0 }
  0x1a   : > { %p710_p7 = pnand %p708_p5, %p705_p3 }
  0x1c   : > { %713 = shalt.err (!%p710_p7)
}
  0x1d   : > { %s714_s7 = scalar_lea.vmem %s917_s22, 1152  ;;  %p722_p2 = scmp.lt.s32.totalorder %s917_s22, %s917_s22 }
  0x1e   : > { %p715_p9 = scmp.ne.s32.totalorder %s917_s22, %s714_s7  ;;  %p723_p6 = scmp.lt.s32.totalorder %s714_s7, %s714_s7 }
  0x20   : > { %p717_p10 = pnand %p715_p9, %p703_p13  ;;  %p724_p4 = por %p723_p6, %p722_p2 }
  0x22   : > { %p718_p1 = pneg %p717_p10 }
  0x24   : > { %p725_p8 = pnand %p724_p4, %p718_p1 }
  0x26   : > { %728 = shalt.err (!%p725_p8)
}
  0x27   : > { %s832_s8 = smov 128   ;;  %s833_s9 = smov 8  }
  0x28   : > { %636 = dma.hbm_to_vmem [thread:$0]  (!%p924_p11), %s1099_s1, 1152, %s917_s22, [#allocation7], %s832_s8, %s832_s8, %s833_s9  }
  0x29   : > { %p25_p2 = scmp.eq.s32.totalorder %s24_s26, 0  ;;  %p34_p1 = scmp.ne.s32.totalorder %s825_s14, %s821_s13 }
  0x2a   : > { %p35_p4 = scmp.eq.s32.totalorder %s829_s15, 0  ;;  %p646_p6 = scmp.lt.s32.totalorder %s829_s15, 2 }
  0x2b   : > { %s960_s17 = scalar_select %p25_p2, %s825_s14, %s27_s25  }
  0x2c   : > { %p36_p8 = por %p35_p4, %p34_p1  ;;  %p1109_p10 = scmp.eq.s32.totalorder %s894_s16, 1 }
  0x2d   : > { %s148_s27 = sand.u32 1, %s825_s14   ;;  %s623_s28 = sshll.u32 %s829_s15, 7 }
  0x2e   : > { %p964_p12 = por %p1109_p10, %p34_p1  ;;  %s608_s29 = sshll.u32 %s148_s27, 3 }
  0x2f   : > { %s973_s4 = scalar_lea.hbm %s1098_s0, %s623_s28  ;;  %s152_s22 = scalar_lea.vmem [#allocation3], %s608_s29 }
  0x30   : > { %s160_s25 = sshll.u32 %s152_s22, 4  ;;  %p975_p11 = pnand %p646_p6, %p36_p8  ;;  %s979_s25 = int_to_ptr.vmem [resolvable:$true] %s160_s25 }
  0x31   : > { %s149_s5 = scalar_lea.sflag [#allocation4], %s148_s27  ;;  %s729_s6 = scalar_lea.hbm %s973_s4, 128 }
  0x32   : > { %p730_p13 = scmp.ne.s32.totalorder %s973_s4, %s729_s6  ;;  %p731_p0 = pneg %p975_p11 }
  0x33   : > { %s734_s9 = scalar_lea.hbm %s1098_s0, 256  ;;  %p735_p7 = scmp.lt.u32.totalorder %s973_s4, %s1098_s0 }
  0x34   : > { %p732_p3 = pnand %p731_p0, %p730_p13  ;;  %p736_p9 = scmp.lt.u32.totalorder %s734_s9, %s729_s6 }
  0x35   : > { %p738_p1 = scmp.lt.u32.totalorder %s729_s6, %s973_s4 }
  0x36   : > { %p733_p5 = pneg %p732_p3  ;;  %p737_p2 = por %p736_p9, %p735_p7 }
  0x38   : > { %p739_p4 = por %p738_p1, %p737_p2 }
  0x3a   : > { %p740_p6 = pnand %p739_p4, %p733_p5 }
  0x3c   : > { %743 = shalt.err (!%p740_p6)
}
  0x3d   : > { %s744_s27 = scalar_lea.vmem %s979_s25, 128  ;;  %s834_s28 = smov [#allocation3]  }
  0x3e   : > { %p745_p8 = scmp.ne.s32.totalorder %s979_s25, %s744_s27  ;;  %s749_s29 = sshll.u32 %s834_s28, 4  ;;  %s750_s29 = int_to_ptr.vmem [resolvable:$false] %s749_s29 }
  0x3f   : > { %s751_s23 = scalar_lea.vmem %s750_s29, 256  ;;  %p752_p3 = scmp.lt.s32.totalorder %s979_s25, %s750_s29 }
  0x40   : > { %p747_p10 = pnand %p745_p8, %p731_p0  ;;  %p753_p7 = scmp.lt.s32.totalorder %s751_s23, %s744_s27 }
  0x42   : > { %p748_p13 = pneg %p747_p10  ;;  %p754_p9 = por %p753_p7, %p752_p3 }
  0x44   : > { %p755_p2 = pnand %p754_p9, %p748_p13 }
  0x46   : > { %758 = shalt.err (!%p755_p2)
}
  0x47   : > { %640 = dma.hbm_to_vmem [thread:$0]  (!%p975_p11), %s973_s4, 128, %s979_s25, %s149_s5  }
  0x48   : > { %p1112_p5 = scmp.ne.s32.totalorder %s1107_s20, 0 }
  0x49   : > { %s1009_s30 = sand.u32 (!%p1112_p5), 1, %s821_s13   ;;  %p1113_p0 = scmp.ne.s32.totalorder (!%p1112_p5), %s1105_s18, 0 }
  0x4a   : > { %169 = sbr.rel (%p1112_p5) target bundleno = 595 (0x253), region = 32  ;;  %s612_s22 = sshll.u32 (!%p1112_p5), %s1009_s30, 3 }
  0x4b   : > { %s172_s6 = scalar_lea.sflag (!%p1112_p5), [#allocation4], %s1009_s30  ;;  %s175_s7 = scalar_lea.vmem (!%p1112_p5), [#allocation3], %s612_s22 }
  0x51   : > { %804 = dma.done.wait (%p1113_p0), %s172_s6, 128  }
  0x52   : > { %806 = vsyncadd (%p1113_p0), %s172_s6, 4294967168  ;;  %p1114_p1 = scmp.eq.s32.totalorder %s894_s16, 0 }
  0x54   : > { %808 = dma.done.wait (%p1114_p1), [#allocation7], 1152   ;;  %p1115_p11 = pmov %p1114_p1 }
  0x55   : > { %vm202_vm0 = vcmask 134144   ;;  %vm204_vm1 = vcmask 273544   ;;  %v835_v0 = vmov 0.0   ;;  %v252_v1 = vld [vmem:[#allocation6 + $0x10] sm:$0xff]  ;;  %s836_s20 = smov 2   ;;  %s837_s4 = smov 17  }
  0x56   : > { %810 = vsyncadd (%p1115_p11), [#allocation7], 4294966144  ;;  %203 = vst.msk [vmem:[#allocation2] sm:$0xf] %vm202_vm0, %v835_v0  ;;  %500 = vmatprep.mubr.f32.mxu0 %v835_v0  ;;  %v206_v2 = vld [vmem:[%s175_s7] sm:$0xff]  ;;  %254 = vrot.lane.b32.xlu1 %v252_v1, %s836_s20  ;;  %v226_v4 = vld [vmem:[#allocation6 + $0x8] sm:$0xff] }
  0x57   : > { %205 = vst.msk [vmem:[#allocation2 + $0x8] sm:$0xf] %vm204_vm1, %v835_v0  ;;  %208 = vrot.lane.b32.xlu0 %v206_v2, %s837_s4  ;;  %v277_v3 = vld [vmem:[#allocation6 + $0x18] sm:$0xff]  ;;  %s838_s18 = smov 16   ;;  %s839_s25 = smov 1   ;;  %v326_v5 = vld [vmem:[#allocation6 + $0x28] sm:$0xff] }
  0x58   : > { %v302_v6 = vld [vmem:[#allocation6 + $0x20] sm:$0xff]  ;;  %s840_s26 = smov 18   ;;  %v376_v7 = vld [vmem:[#allocation6 + $0x38] sm:$0xff]  ;;  %v351_v8 = vld [vmem:[#allocation6 + $0x30] sm:$0xff]  ;;  %s841_s5 = smov 33   ;;  %vm215_vm2 = vcmask 1043592  }
  0x59   : > { %s842_s8 = smov 32   ;;  %v401_v9 = vld [vmem:[#allocation6 + $0x40] sm:$0xff]  ;;  %s843_s9 = smov 34   ;;  %vm216_vm3 = vcmask 1047556   ;;  %vm211_vm4 = vcmask 138240   ;;  %vm231_vm6 = vcmask 7168  }
  0x5a   : > { %279 = vrot.lane.b32.xlu1 %v277_v3, %s838_s18  ;;  %vm217_vm5 = vmor %vm216_vm3, %vm215_vm2  ;;  %vm257_vm7 = vcmask 15360   ;;  %s844_s10 = smov 127   ;;  %vm282_vm8 = vcmask 130048   ;;  %s845_s11 = smov 126   ;;  %vm331_vm9 = vcmask 146432   ;;  %vm356_vm10 = vcmask 261120  }
  0x5b   : > { %228 = vrot.lane.b32.xlu0 %v226_v4, %s839_s25  ;;  %s846_s27 = smov 112   ;;  %s847_s28 = smov 111   ;;  %vm381_vm11 = vcmask 269312   ;;  %vm406_vm12 = vcmask 277504   ;;  %vm245_vm13 = vcmask 1043456   ;;  %vm247_vm14 = vcmask 1039360  }
  0x5c   : > { %s848_s29 = smov 110   ;;  %s849_s23 = smov 96   ;;  %vm272_vm15 = vcmask 1031168   ;;  %vm321_vm1 = vcmask 908288   ;;  %vm346_vm2 = vcmask 900096   ;;  %vm371_vm3 = vcmask 785408  }
  0x5d   : > { %s850_s22 = smov 95   ;;  %s851_s6 = smov 94  }
  0x5e   : > { %328 = vrot.lane.b32.xlu1 %v326_v5, %s840_s26  ;;  %s624_s26 = sshll.u32 %s894_s16, 8  ;;  %s852_s16 = smov [#allocation8]  }
  0x5f   : > { %304 = vrot.lane.b32.xlu0 %v302_v6, %s837_s4  ;;  %v221_v6 = vld [vmem:[#allocation6] sm:$0xff]  ;;  %s614_s4 = sshll.u32 %s1009_s30, 4 }
  0x60   : > { %s201_s18 = scalar_lea.vmem [#allocation8], %s614_s4 }
  0x61   : > { %s524_s25 = sshll.u32 %s201_s18, 4  ;;  %s1051_s25 = int_to_ptr.vmem [resolvable:$true] %s524_s25 }
  0x62   : > { %378 = vrot.lane.b32.xlu1 %v376_v7, %s841_s5 }
  0x63   : > { %353 = vrot.lane.b32.xlu0 %v351_v8, %s842_s8 }
  0x67   : > { %403 = vrot.lane.b32.xlu0 %v401_v9, %s843_s9  ;;  %s1056_s9 = scalar_lea.hbm %s1101_s3, %s624_s26 }
  0xc8   : > { %v255_v13 = vpop.permute.xlu1 %254 }
  0xc9   : > { %v209_v10 = vpop.permute.xlu0 %208  ;;  %v256_v16 = vrot.slane %v255_v13, 4 }
  0xca   : > { %v210_v11 = vrot.slane %v209_v10, 4 }
  0xcb   : > { %v258_v23 = vsel %vm257_vm7, %v256_v16, %v255_v13 }
  0xcc   : > { %v212_v12 = vsel %vm211_vm4, %v210_v11, %v209_v10  ;;  %219 = vst.msk [vmem:[#allocation2 + $0x8] sm:$0xf] %vm202_vm0, %v210_v11  ;;  %v280_v21 = vpop.permute.xlu1 %279  ;;  %vm297_vm0 = vcmask 916480  }
  0xcd   : > { %218 = vst.msk [vmem:[#allocation2] sm:$0xff] %vm217_vm5, %v212_v12  ;;  %v229_v14 = vpop.permute.xlu0 %228  ;;  %v281_v24 = vrot.slane %v280_v21, 4  ;;  %vm421_vm5 = vcmask 769024  }
  0xce   : > { %v230_v15 = vrot.slane %v229_v14, 4 }
  0xcf   : > { %v283_v28 = vsel %vm282_vm8, %v281_v24, %v280_v21 }
  0xd0   : > { %v232_v19 = vsel %vm231_vm6, %v230_v15, %v229_v14  ;;  %v329_v30 = vpop.permute.xlu1 %328  ;;  %vm428_vm6 = vcmask 31744  }
  0xd1   : > { %v305_v25 = vpop.permute.xlu0 %304  ;;  %v330_v33 = vrot.slane %v329_v30, 4 }
  0xd2   : > { %v306_v29 = vrot.slane %v305_v25, 4 }
  0xd3   : > { %v224_v17 = vld [vmem:[#allocation2 + $0x8] sm:$0xf]  ;;  %v332_v38 = vsel %vm331_vm9, %v330_v33, %v329_v30 }
  0xd4   : > { %v1024_v18 = vld [vmem:[#allocation2] sm:$0xff]  ;;  %v236_v20 = vmul.f32 %v230_v15, %v224_v17  ;;  %v262_v26 = vmul.f32 %v256_v16, %v224_v17  ;;  %v287_v31 = vmul.f32 %v281_v24, %v224_v17  ;;  %v307_v34 = vsel %vm211_vm4, %v306_v29, %v305_v25  ;;  %v379_v40 = vpop.permute.xlu1 %378 }
  0xd5   : > { %v235_v22 = vmul.f32 %v232_v19, %v1024_v18  ;;  %v261_v27 = vmul.f32 %v258_v23, %v1024_v18  ;;  %v286_v32 = vmul.f32 %v283_v28, %v1024_v18  ;;  %v354_v35 = vpop.permute.xlu0 %353  ;;  %v311_v36 = vmul.f32 %v306_v29, %v224_v17 }
  0xd6   : > { %241 = vrot.lane.b32.xlu0 %v236_v20, %s844_s10  ;;  %v310_v37 = vmul.f32 %v307_v34, %v1024_v18  ;;  %v355_v39 = vrot.slane %v354_v35, 4  ;;  %v336_v41 = vmul.f32 %v330_v33, %v224_v17  ;;  %v335_v42 = vmul.f32 %v332_v38, %v1024_v18 }
  0xd7   : > { %239 = vrot.lane.b32.xlu1 %v235_v22, %s844_s10  ;;  %v380_v43 = vrot.slane %v379_v40, 4  ;;  %v222_v13 = vmul.f32 %v221_v6, %v1024_v18  ;;  %vm396_vm4 = vcmask 777216   ;;  %s510_s10 = scalar_lea.sflag [#allocation5], %s1009_s30 }
  0xd8   : > { %v357_v44 = vsel %vm356_vm10, %v355_v39, %v354_v35  ;;  %v361_v46 = vmul.f32 %v355_v39, %v224_v17 }
  0xd9   : > { %v404_v45 = vpop.permute.xlu0 %403  ;;  %v360_v47 = vmul.f32 %v357_v44, %v1024_v18  ;;  %v382_v48 = vsel %vm381_vm11, %v380_v43, %v379_v40  ;;  %v386_v50 = vmul.f32 %v380_v43, %v224_v17 }
  0xda   : > { %267 = vrot.lane.b32.xlu0 %v262_v26, %s845_s11  ;;  %v405_v49 = vrot.slane %v404_v45, 4  ;;  %v385_v51 = vmul.f32 %v382_v48, %v1024_v18 }
  0xdb   : > { %265 = vrot.lane.b32.xlu1 %v261_v27, %s845_s11  ;;  %s759_s11 = scalar_lea.vmem %s1051_s25, 256 }
  0xdc   : > { %v407_v52 = vsel %vm406_vm12, %v405_v49, %v404_v45  ;;  %v411_v53 = vmul.f32 %v405_v49, %v224_v17  ;;  %p760_p4 = scmp.ne.s32.totalorder %s1051_s25, %s759_s11 }
  0xdd   : > { %v410_v54 = vmul.f32 %v407_v52, %v1024_v18 }
  0xde   : > { %292 = vrot.lane.b32.xlu0 %v287_v31, %s846_s27  ;;  %p761_p6 = pnand %p760_p4, %p964_p12 }
  0xdf   : > { %290 = vrot.lane.b32.xlu1 %v286_v32, %s846_s27  ;;  %s763_s27 = sshll.u32 %s852_s16, 4  ;;  %s764_s27 = int_to_ptr.vmem [resolvable:$false] %s763_s27 }
  0xe0   : > { %p762_p8 = pneg %p761_p6  ;;  %p766_p10 = scmp.lt.s32.totalorder %s1051_s25, %s764_s27 }
  0xe2   : > { %316 = vrot.lane.b32.xlu0 %v311_v36, %s847_s28 }
  0xe3   : > { %314 = vrot.lane.b32.xlu1 %v310_v37, %s847_s28  ;;  %s765_s28 = scalar_lea.vmem %s764_s27, 512 }
  0xe4   : > { %p767_p13 = scmp.lt.s32.totalorder %s765_s28, %s759_s11 }
  0xe6   : > { %341 = vrot.lane.b32.xlu0 %v336_v41, %s848_s29  ;;  %p768_p3 = por %p767_p13, %p766_p10 }
  0xe7   : > { %339 = vrot.lane.b32.xlu1 %v335_v42, %s848_s29 }
  0xe8   : > { %p769_p7 = pnand %p768_p3, %p762_p8 }
  0xea   : > { %366 = vrot.lane.b32.xlu0 %v361_v46, %s849_s23 }
  0xeb   : > { %364 = vrot.lane.b32.xlu1 %v360_v47, %s849_s23 }
  0xee   : > { %391 = vrot.lane.b32.xlu0 %v386_v50, %s850_s22  ;;  %v425_v50 = vld [vmem:[%s1100_s2] sm:$0xff] }
  0xef   : > { %389 = vrot.lane.b32.xlu1 %v385_v51, %s850_s22 }
  0xf2   : > { %416 = vrot.lane.b32.xlu0 %v411_v53, %s851_s6 }
  0xf3   : > { %414 = vrot.lane.b32.xlu1 %v410_v54, %s851_s6 }
 0x148   : > { %v242_v55 = vpop.permute.xlu0 %241 }
 0x149   : > { %v240_v56 = vpop.permute.xlu1 %239  ;;  %v244_v61 = vrot.slane %v242_v55, 4 }
 0x14a   : > { %v243_v62 = vrot.slane %v240_v56, 4 }
 0x14c   : > { %v268_v57 = vpop.permute.xlu0 %267  ;;  %v246_v3 = vsel %vm245_vm13, %v243_v62, %v244_v61 }
 0x14d   : > { %v266_v58 = vpop.permute.xlu1 %265  ;;  %v270_v63 = vrot.slane %v268_v57, 4  ;;  %v248_v11 = vsel %vm247_vm14, %v240_v56, %v246_v3 }
 0x14e   : > { %v269_v0 = vrot.slane %v266_v58, 4  ;;  %v250_v19 = vadd.f32 %v248_v11, %v222_v13 }
 0x150   : > { %v293_v59 = vpop.permute.xlu0 %292  ;;  %v271_v7 = vsel %vm245_vm13, %v269_v0, %v270_v63 }
 0x151   : > { %v291_v60 = vpop.permute.xlu1 %290  ;;  %v295_v4 = vrot.slane %v293_v59, 4  ;;  %v273_v17 = vsel %vm272_vm15, %v266_v58, %v271_v7 }
 0x152   : > { %v294_v5 = vrot.slane %v291_v60, 4  ;;  %v275_v25 = vadd.f32 %v273_v17, %v250_v19 }
 0x154   : > { %v317_v1 = vpop.permute.xlu0 %316  ;;  %v296_v14 = vsel %vm245_vm13, %v294_v5, %v295_v4 }
 0x155   : > { %v315_v2 = vpop.permute.xlu1 %314  ;;  %v319_v8 = vrot.slane %v317_v1, 4  ;;  %v298_v22 = vsel %vm297_vm0, %v291_v60, %v296_v14 }
 0x156   : > { %v318_v9 = vrot.slane %v315_v2, 4  ;;  %v300_v18 = vadd.f32 %v298_v22, %v275_v25 }
 0x158   : > { %v342_v10 = vpop.permute.xlu0 %341  ;;  %v320_v20 = vsel %vm245_vm13, %v318_v9, %v319_v8 }
 0x159   : > { %v340_v12 = vpop.permute.xlu1 %339  ;;  %v344_v15 = vrot.slane %v342_v10, 4  ;;  %v322_v28 = vsel %vm321_vm1, %v315_v2, %v320_v20 }
 0x15a   : > { %v343_v16 = vrot.slane %v340_v12, 4  ;;  %v324_v34 = vadd.f32 %v322_v28, %v300_v18 }
 0x15c   : > { %v367_v21 = vpop.permute.xlu0 %366  ;;  %v345_v26 = vsel %vm245_vm13, %v343_v16, %v344_v15 }
 0x15d   : > { %v369_v23 = vrot.slane %v367_v21, 4  ;;  %v365_v24 = vpop.permute.xlu1 %364  ;;  %v347_v31 = vsel %vm346_vm2, %v340_v12, %v345_v26 }
 0x15e   : > { %v368_v27 = vrot.slane %v365_v24, 4  ;;  %v349_v37 = vadd.f32 %v347_v31, %v324_v34 }
 0x160   : > { %v370_v29 = vsel %vm245_vm13, %v368_v27, %v369_v23  ;;  %v392_v30 = vpop.permute.xlu0 %391 }
 0x161   : > { %v394_v32 = vrot.slane %v392_v30, 4  ;;  %v390_v33 = vpop.permute.xlu1 %389  ;;  %v372_v36 = vsel %vm371_vm3, %v365_v24, %v370_v29 }
 0x162   : > { %v393_v35 = vrot.slane %v390_v33, 4  ;;  %v374_v43 = vadd.f32 %v372_v36, %v349_v37 }
 0x164   : > { %v395_v38 = vsel %vm245_vm13, %v393_v35, %v394_v32  ;;  %v417_v39 = vpop.permute.xlu0 %416 }
 0x165   : > { %v397_v40 = vsel %vm396_vm4, %v390_v33, %v395_v38  ;;  %v419_v41 = vrot.slane %v417_v39, 4  ;;  %v415_v42 = vpop.permute.xlu1 %414 }
 0x166   : > { %v418_v44 = vrot.slane %v415_v42, 4  ;;  %v399_v45 = vadd.f32 %v397_v40, %v374_v43 }
 0x168   : > { %v420_v46 = vsel %vm245_vm13, %v418_v44, %v419_v41 }
 0x169   : > { %v422_v47 = vsel %vm421_vm5, %v415_v42, %v420_v46 }
 0x16a   : > { %v424_v48 = vadd.f32 %v422_v47, %v399_v45 }
 0x16c   : > { %v427_v49 = vcombine.high %v424_v48, %v424_v48 }
 0x16e   : > { %615 = vmatprep.subr.msk.mxu0 %vm245_vm13, %v427_v49 }
 0x16f   : > { %616 = vmatpush1.msk.msra.mxu0 %vm245_vm13, %v424_v48 }
 0x170   : > { %617 = vmatmul.mubr.msk.f32.vlgmr.msra.gmra.mrb[0].mxu0 %vm428_vm6, %v425_v50 }
 0x243   : > { %v502_v51 = vpop.f32.mrb[0].mxu0 }
 0x244   : > { %507 = vst [vmem:[%s201_s18] sm:$0xff] %v502_v51  ;;  %v504_v52 = vpop.f32.mrb[1].mxu0 }
 0x245   : > { %508 = vst [vmem:[%s201_s18 + $0x8] sm:$0xff] %v504_v52 }
 0x246   : > { %772 = shalt.err (!%p769_p7)
}
 0x247   : > { %s773_s30 = scalar_lea.hbm %s1056_s9, 256  ;;  %s777_s22 = scalar_lea.hbm %s1101_s3, 512 }
 0x248   : > { %p774_p9 = scmp.ne.s32.totalorder %s1056_s9, %s773_s30  ;;  %p778_p0 = scmp.lt.u32.totalorder %s1056_s9, %s1101_s3 }
 0x249   : > { %p779_p1 = scmp.lt.u32.totalorder %s777_s22, %s773_s30  ;;  %p781_p4 = scmp.lt.u32.totalorder %s773_s30, %s1056_s9 }
 0x24a   : > { %p775_p2 = pnand %p774_p9, %p964_p12 }
 0x24b   : > { %p780_p11 = por %p779_p1, %p778_p0 }
 0x24c   : > { %p776_p5 = pneg %p775_p2 }
 0x24d   : > { %p782_p6 = por %p781_p4, %p780_p11 }
 0x24f   : > { %p783_p8 = pnand %p782_p6, %p776_p5 }
 0x251   : > { %786 = shalt.err (!%p783_p8)
}
 0x252   : > { %631 = dma.vmem_to_hbm [thread:$0]  (%p964_p12), %s1051_s25, 256, %s1056_s9, %s510_s10  }
 0x253 PF: > { %s536_s20 = sand.u32 1, %s817_s12   ;;  %p1116_p10 = scmp.ne.s32.totalorder %s1106_s19, 0 }
 0x254   : > { %p1117_p13 = scmp.ge.s32.totalorder %s829_s15, 2  ;;  %s537_s4 = scalar_lea.sflag [#allocation5], %s536_s20 }
 0x256   : > { %p642_p3 = pnand %p1117_p13, %p1116_p10 }
 0x258   : > { %812 = dma.done.wait (!%p642_p3), %s537_s4, 256  }
 0x259   : > { %814 = vsyncadd (!%p642_p3), %s537_s4, 4294967040  ;;  %p17_p7 = scmp.ge.s32.totalorder %s929_s24, 4   ;;  %s1118_s12 = smov %s821_s13 }
 0x25a   : > { %s1119_s13 = smov %s825_s14  ;;  %s1120_s14 = smov %s960_s17 }
 0x25b   : > { %s1121_s15 = smov %s929_s24  ;;  %19 = sbr.rel (!%p17_p7) target bundleno = 6 (0x6), region = 89 }
 0x262   :  { %542 = vsyncpa [#allocation4], 1 }
 0x263   :  { %544 = vsyncpa [#allocation4 + $0x1], 1 }
 0x264   :  { %545 = vsyncpa [#allocation7], 1 }
 0x265   :  { %546 = vsyncpa [#allocation5], 1 }
 0x266   :  { %548 = vsyncpa [#allocation5 + $0x1], 1 }

</bundles_post_ra>
